<compile_context>
chip_gen: v7x
topology: tpu7x:2x2x1
jax: 0.10.0
libtpu: 0.0.40
codegen_flags: <defaults>
</compile_context>

<pallas_src>
import jax
import jax.numpy as jnp
from jax.experimental import pallas as pl
from jax.experimental.pallas import tpu as pltpu


# Tile caps: 256 x 1024 x 4 B = 1 MiB per f32 block; x2 (in+out) x2 (double
# buffering) = 4 MiB of VMEM -- safe on every generation's default scoped VMEM.
_MAX_ROW_TILE = 256
_MAX_LANE_TILE = 1024


def _chomp_kernel(x_ref, o_ref):
    # Both refs are (R_T, L_T) blocks. On the fast path the input block was
    # already shrunk to the kept width, so this is a straight VMEM copy. On the
    # narrow path (l_out < 128) the input block carries the full length and we
    # statically slice off the chomped tail (shapes are trace-time constants).
    l_keep = o_ref.shape[-1]
    if x_ref.shape[-1] == l_keep:
        o_ref[...] = x_ref[...]
    else:
        o_ref[...] = x_ref[:, :l_keep]


def _pick_tile(extent: int, multiple: int, max_tile: int) -> int:
    """Largest tile <= max_tile that is a multiple of `multiple`; if the whole
    extent is smaller than one multiple, use the full extent (full-extent
    blocks are always legal under the (8,128) rule)."""
    if extent <= multiple:
        return extent
    t = min(extent, max_tile)
    return (t // multiple) * multiple


def chomp1d(x: jax.Array, chomp_size: int) -> jax.Array:
    """Pallas implementation of Chomp1d.forward: x[:, :, :-chomp_size]."""
    assert x.ndim == 3, "expected (N, C, L) input"
    n, c, l = x.shape
    # PyTorch's `:-0` slice would produce an empty tensor (degenerate); we only
    # support the meaningful TCN case 0 < chomp_size < L.
    assert 0 < chomp_size < l, "chomp_size must be in (0, L)"
    l_out = l - chomp_size

    dtype_bytes = jnp.dtype(x.dtype).itemsize
    # Sublane packing: 8 rows for 32-bit, 16 for 16-bit, 32 for 8-bit dtypes.
    sublane = max(8, 32 // max(dtype_bytes, 1))

    # Collapse (N, C) -> rows so small batch/channel counts still fill vregs
    # along the sublane axis and the grid has fewer, fatter steps.
    rows = n * c
    x2 = x.reshape(rows, l)

    r_t = _pick_tile(rows, sublane, _MAX_ROW_TILE)

    if l_out >= 128:
        # Fast path: lane-dense tiles, input block == output block, so the
        # chomped tail is never read from HBM (except possibly a sliver on the
        # final ragged tile, which is bounds-clamped by the pipeline).
        l_t_out = _pick_tile(l_out, 128, _MAX_LANE_TILE)
        l_t_in = l_t_out
    else:
        # Narrow path: l_out is smaller than one 128-lane tile, so a lane-dense
        # kept-width block is impossible; use full-extent blocks (always legal)
        # and slice inside the kernel. Wasted read is < 128 lanes per row block.
        l_t_out = l_out
        l_t_in = l

    grid = (pl.cdiv(rows, r_t), pl.cdiv(l_out, l_t_out))

    out2 = pl.pallas_call(
        _chomp_kernel,
        out_shape=jax.ShapeDtypeStruct((rows, l_out), x.dtype),
        grid_spec=pltpu.PrefetchScalarGridSpec(
            num_scalar_prefetch=0,
            grid=grid,
            in_specs=[pl.BlockSpec((r_t, l_t_in), lambda i, j: (i, j))],
            out_specs=pl.BlockSpec((r_t, l_t_out), lambda i, j: (i, j)),
        ),
        compiler_params=pltpu.CompilerParams(
            dimension_semantics=("parallel", "parallel"),
        ),
        # Zero-FLOP memory op: tell XLA's scheduler so it can overlap it.
        cost_estimate=pl.CostEstimate(
            flops=0,
            transcendentals=0,
            bytes_accessed=2 * rows * l_out * dtype_bytes,
        ),
    )(x2)

    return out2.reshape(n, c, l_out)


if __name__ == "__main__":
    k_small, k_big = jax.random.split(jax.random.PRNGKey(0))

    # 1) Small shape matching the module's (N, C, L) layout (narrow-lane path).
    N, C, L = 2, 4, 16
    chomp = 4
    x = jax.random.normal(k_small, (N, C, L), dtype=jnp.float32)
    out = jax.block_until_ready(chomp1d(x, chomp))
    ref = x[:, :, :-chomp]
    assert out.shape == (N, C, L - chomp), out.shape
    assert jnp.array_equal(out, ref), "mismatch vs reference slice (small)"

    # 2) Larger shape exercising the lane-dense tiled path with ragged
    #    remainder tiles in both the row and lane grid axes.
    N2, C2, L2 = 3, 20, 400
    chomp2 = 80
    x2 = jax.random.normal(k_big, (N2, C2, L2), dtype=jnp.float32)
    out2 = jax.block_until_ready(chomp1d(x2, chomp2))
    ref2 = x2[:, :, :-chomp2]
    assert out2.shape == (N2, C2, L2 - chomp2), out2.shape
    assert jnp.array_equal(out2, ref2), "mismatch vs reference slice (tiled)"

    print("KERNEL_OK")
</pallas_src>

<mosaic_0001>
module attributes {stable_mosaic.version = 11 : i64} {
  func.func @_chomp_kernel(%arg0: i32, %arg1: i32, %arg2: memref<8x16xf32, #tpu.memory_space<vmem>>, %arg3: memref<8x12xf32, #tpu.memory_space<vmem>>) attributes {dimension_semantics = [#tpu.dimension_semantics<parallel>, #tpu.dimension_semantics<parallel>], iteration_bounds = array<i64: 1, 1>, scalar_prefetch = 0 : i64, scratch_operands = 0 : i64, tpu.core_type = #tpu.core_type<tc>, window_params = [{transform_indices = @transform_0, window_bounds = array<i64: 8, 16>}, {transform_indices = @transform_1, window_bounds = array<i64: 8, 12>}]} {
    %c0 = arith.constant 0 : index
    %c0_0 = arith.constant 0 : index
    %0 = vector.load %arg2[%c0, %c0_0] : memref<8x16xf32, #tpu.memory_space<vmem>>, vector<8x12xf32>
    %c0_1 = arith.constant 0 : index
    %c0_2 = arith.constant 0 : index
    %1 = vector.load %arg3[%c0_1, %c0_2] : memref<8x12xf32, #tpu.memory_space<vmem>>, vector<8x12xf32>
    tpu.vector_store %arg3[%c0_1, %c0_2], %0 {strides = array<i32>} : memref<8x12xf32, #tpu.memory_space<vmem>>, vector<8x12xf32>,
    return
  }
  func.func @transform_0(%arg0: i32, %arg1: i32) -> (i32, i32) {
    %c0_i32 = arith.constant 0 : i32
    return %arg0, %arg1 : i32, i32
  }
  func.func @transform_1(%arg0: i32, %arg1: i32) -> (i32, i32) {
    %c0_i32 = arith.constant 0 : i32
    return %arg0, %arg1 : i32, i32
  }
}

</mosaic_0001>

<bundles_post_ra>
// kernel: tpu_custom_call.1
= control target key start
LH: loop header
LB: loop body
LE: loop exit
PB: predicated region body
PF: predicated region fallthrough
CT: control target
= control target key end

     0   :  { %6 = vsyncpa [#allocation3], 0  ;;  %s125_s0 = inlined_call_operand.hbm [shape: f32[8,16], index: 0, kind: input, shape index: {}]   ;;  %s126_s1 = inlined_call_operand.hbm [shape: f32[8,12], index: 1, kind: output, shape index: {}]  }
   0x1   :  { %7 = vsyncpa [#allocation4], 0  ;;  %s89_s6 = smov [#allocation2]   ;;  %s41_s10 = scalar_lea.hbm %s125_s0, 128 }
   0x2   :  { %s14_s7 = sshll.u32 %s89_s6, 4  ;;  %p42_p0 = scmp.ne.s32.totalorder %s125_s0, %s41_s10  ;;  %s15_s7 = int_to_ptr.vmem [resolvable:$true] %s14_s7 }
   0x3   :  { %p45_p1 = scmp.lt.u32.totalorder %s41_s10, %s125_s0 }
   0x5   :  { %p47_p2 = pnand %p45_p1, %p42_p0 }
   0x7   :  { %50 = shalt.err (!%p47_p2)
}
   0x8   :  { %s51_s15 = scalar_lea.vmem %s15_s7, 128  ;;  %p56_p4 = scmp.lt.s32.totalorder %s15_s7, %s15_s7 }
   0x9   :  { %p52_p3 = scmp.ne.s32.totalorder %s15_s7, %s51_s15  ;;  %p57_p5 = scmp.lt.s32.totalorder %s51_s15, %s51_s15 }
   0xb   :  { %p58_p6 = por %p57_p5, %p56_p4 }
   0xd   :  { %p59_p7 = pnand %p58_p6, %p52_p3 }
   0xf   :  { %62 = shalt.err (!%p59_p7)
}
  0x10   :  { %17 = dma.hbm_to_vmem [thread:$0]  %s125_s0, 128, %s15_s7, [#allocation3]  }
  0x11   :  { %85 = dma.done.wait [#allocation3], 128  }
  0x12   :  { %86 = vsyncadd [#allocation3], 4294967168  ;;  %s90_s18 = smov [#allocation5]   ;;  %vm22_vm0 = vcmask 97280   ;;  %v21_v0 = vld [vmem:[#allocation2] sm:$0xff] }
  0x13   :  { %s30_s19 = sshll.u32 %s90_s18, 4  ;;  %23 = vst.msk [vmem:[#allocation5] sm:$0xff] %vm22_vm0, %v21_v0  ;;  %s31_s19 = int_to_ptr.vmem [resolvable:$true] %s30_s19 }
  0x14   :  { %s63_s20 = scalar_lea.vmem %s31_s19, 128  ;;  %p68_p9 = scmp.lt.s32.totalorder %s31_s19, %s31_s19 }
  0x15   :  { %p64_p8 = scmp.ne.s32.totalorder %s31_s19, %s63_s20  ;;  %p69_p10 = scmp.lt.s32.totalorder %s63_s20, %s63_s20 }
  0x17   :  { %p70_p11 = por %p69_p10, %p68_p9 }
  0x19   :  { %p71_p12 = pnand %p70_p11, %p64_p8 }
  0x1b   :  { %74 = shalt.err (!%p71_p12)
}
  0x1c   :  { %s75_s23 = scalar_lea.hbm %s126_s1, 128 }
  0x1d   :  { %p76_p13 = scmp.ne.s32.totalorder %s126_s1, %s75_s23  ;;  %p79_p0 = scmp.lt.u32.totalorder %s75_s23, %s126_s1 }
  0x1f   :  { %p81_p1 = pnand %p79_p0, %p76_p13 }
  0x21   :  { %84 = shalt.err (!%p81_p1)
}
  0x22   :  { %33 = dma.vmem_to_hbm [thread:$0]  %s31_s19, 128, %s126_s1, [#allocation4]  }
  0x23   :  { %87 = dma.done.wait [#allocation4], 128  }
  0x24   :  { %88 = vsyncadd [#allocation4], 4294967168 }
  0x25   :  { %37 = vsyncpa [#allocation3], 1 }
  0x26   :  { %38 = vsyncpa [#allocation4], 1 }

</bundles_post_ra>
